<compile_context>
chip_gen: v5e
topology: v5e:2x2
jax: 0.10.0
libtpu: 0.0.40
codegen_flags: <defaults>
</compile_context>

<pallas_src>
import jax
import jax.numpy as jnp
from jax import lax
from jax.experimental import pallas as pl
from jax.experimental.pallas import tpu as pltpu


def _cdiv(a, b):
    return (a + b - 1) // b


def _round_up(n, m):
    return _cdiv(n, m) * m


def _generation_budget():
    """Returns (x-tile byte budget, vmem_limit_bytes or None) per TPU generation."""
    kind = ""
    try:
        kind = jax.devices()[0].device_kind.lower()
    except Exception:
        pass
    if "v7" in kind or "tpu7" in kind:
        # v7x: ~3.2 TB/s HBM wants big tiles, but only 64 MiB VMEM per TC.
        # 2 x 12 MiB double-buffered x tiles + out/params stays < 30 MiB.
        return 12 * 2**20, 30 * 2**20
    if "v6" in kind or "tpu6" in kind:
        # v6e: 128 MiB VMEM, ~1.4 TB/s -> 12 MiB tiles; raise the 32 MiB default.
        return 12 * 2**20, 64 * 2**20
    if "v5e" in kind or "v5 lite" in kind or "v5lite" in kind:
        # v5e: ~0.8 TB/s; 6 MiB tiles already amortize step overhead to <5%,
        # but double-buffering them exceeds the 16 MiB scoped-VMEM default.
        return 6 * 2**20, 48 * 2**20
    # Unknown generation: stay under the smallest scoped-VMEM default (16 MiB).
    return 4 * 2**20, None


def _diagonal_kernel(p_ref, x_ref, o_ref):
    # p_ref: (4, D) = [w_pos, v_pos, w_neg, v_neg]  (resident, constant index)
    # x_ref: (bm, D) batch tile
    # o_ref: (1, bm) lane-dense row of per-example outputs
    beta = p_ref[0:1, :] * p_ref[1:2, :] - p_ref[2:3, :] * p_ref[3:4, :]  # (1, D)
    # Contract D on the MXU -> (1, bm): reduction avoids cross-lane XLU work
    # and the result is lane-dense along batch (unmasked stores).
    o_ref[...] = lax.dot_general(
        beta,
        x_ref[...],
        dimension_numbers=(((1,), (1,)), ((), ())),
        preferred_element_type=jnp.float32,
        precision=lax.Precision.HIGHEST,  # bit-faithful f32 vs `x @ beta`
    ).astype(o_ref.dtype)


def diagonal_net_forward(x, w_pos, v_pos, w_neg, v_neg, *, bm=None):
    """x: (B, D); params: (D,). Returns (B,) = x @ (w_pos*v_pos - w_neg*v_neg)."""
    B, D = x.shape
    itemsize = jnp.dtype(x.dtype).itemsize
    tile_bytes, vmem_limit = _generation_budget()

    # Batch-tile row cap from the byte budget; multiple of 128 lanes so the
    # (1, bm) output block stores stay unmasked.
    bm_cap = max(128, (tile_bytes // (D * itemsize)) // 128 * 128)
    if bm is not None:  # optional override for testing / tuning
        bm_cap = max(128, min(bm_cap, _round_up(bm, 128)))

    # Number of batch tiles: enough to respect the byte budget, and at least 2
    # for non-trivial batches so a 2-TensorCore chip (v7x) keeps both cores
    # busy via the "parallel" grid axis.
    n_tiles = _cdiv(B, bm_cap)
    if n_tiles == 1 and B >= 256:
        n_tiles = 2

    if n_tiles <= 1:
        # Whole batch in one block: block dims == full array dims (always
        # legal regardless of alignment), no padding at all.
        grid = (1,)
        x_spec = pl.BlockSpec((B, D), lambda i: (0, 0))
        out_spec = pl.BlockSpec((1, B), lambda i: (0, 0))
    else:
        # Ragged multi-tile path: no jnp.pad copy of x.  The last block may
        # read past row B-1; those rows only produce values in output lanes
        # >= B, which are masked on the write-back.
        bm_eff = _round_up(_cdiv(B, n_tiles), 128)
        grid = (_cdiv(B, bm_eff),)
        x_spec = pl.BlockSpec((bm_eff, D), lambda i: (i, 0))
        out_spec = pl.BlockSpec((1, bm_eff), lambda i: (0, i))

    # Single stacked parameter array: one constant-index DMA stream.
    params = jnp.stack([w_pos, v_pos, w_neg, v_neg], axis=0)  # (4, D)

    out = pl.pallas_call(
        _diagonal_kernel,
        out_shape=jax.ShapeDtypeStruct((1, B), x.dtype),
        grid_spec=pltpu.PrefetchScalarGridSpec(
            num_scalar_prefetch=0,
            grid=grid,
            in_specs=[
                pl.BlockSpec((4, D), lambda i: (0, 0)),  # stacked params
                x_spec,                                   # x batch tile
            ],
            out_specs=out_spec,
        ),
        compiler_params=pltpu.CompilerParams(
            dimension_semantics=("parallel",),
            vmem_limit_bytes=vmem_limit,
        ),
        cost_estimate=pl.CostEstimate(
            flops=2 * B * D,
            transcendentals=0,
            bytes_accessed=B * D * itemsize + 4 * D * itemsize + B * itemsize,
        ),
    )(params, x)

    return out[0, :]  # (B,)


if __name__ == "__main__":
    # --- Primary check: shapes / init consistent with DiagonalNet ---------
    B, D = 16, 128
    scaling = 1.0
    # DiagonalNet.__init__: scaling * torch.ones(inp_dim) for each parameter.
    w_pos = scaling * jnp.ones((D,), dtype=jnp.float32)
    v_pos = scaling * jnp.ones((D,), dtype=jnp.float32)
    w_neg = scaling * jnp.ones((D,), dtype=jnp.float32)
    v_neg = scaling * jnp.ones((D,), dtype=jnp.float32)

    key = jax.random.PRNGKey(0)
    x = jax.random.normal(key, (B, D), dtype=jnp.float32)

    out = jax.block_until_ready(diagonal_net_forward(x, w_pos, v_pos, w_neg, v_neg))
    ref = x @ (w_pos * v_pos - w_neg * v_neg)
    assert out.shape == (B,)
    assert jnp.allclose(out, ref, atol=1e-5, rtol=1e-5), "mismatch vs reference"

    # --- Secondary check: ragged batch, small forced tiles (masked tail) ---
    B2, D2 = 300, 256
    k1, k2, k3, k4, k5 = jax.random.split(jax.random.PRNGKey(0), 5)
    x2 = jax.random.normal(k1, (B2, D2), dtype=jnp.float32)
    wp2 = jax.random.normal(k2, (D2,), dtype=jnp.float32)
    vp2 = jax.random.normal(k3, (D2,), dtype=jnp.float32)
    wn2 = jax.random.normal(k4, (D2,), dtype=jnp.float32)
    vn2 = jax.random.normal(k5, (D2,), dtype=jnp.float32)

    ref2 = x2 @ (wp2 * vp2 - wn2 * vn2)
    out2 = jax.block_until_ready(
        diagonal_net_forward(x2, wp2, vp2, wn2, vn2, bm=128))
    assert out2.shape == (B2,)
    assert jnp.allclose(out2, ref2, atol=1e-4, rtol=1e-4), "mismatch (ragged path)"

    # --- Third check: default sizing -> forced 2-tile split (v7x 2-TC path) --
    out3 = jax.block_until_ready(diagonal_net_forward(x2, wp2, vp2, wn2, vn2))
    assert out3.shape == (B2,)
    assert jnp.allclose(out3, ref2, atol=1e-4, rtol=1e-4), "mismatch (2-tile path)"

    print("KERNEL_OK")
</pallas_src>

<mosaic_0001>
module attributes {stable_mosaic.version = 11 : i64} {
  func.func @_diagonal_kernel(%arg0: i32, %arg1: memref<4x128xf32, #tpu.memory_space<vmem>>, %arg2: memref<16x128xf32, #tpu.memory_space<vmem>>, %arg3: memref<1x16xf32, #tpu.memory_space<vmem>>) attributes {dimension_semantics = [#tpu.dimension_semantics<parallel>], iteration_bounds = array<i64: 1>, scalar_prefetch = 0 : i64, scratch_operands = 0 : i64, tpu.core_type = #tpu.core_type<tc>, window_params = [{pipeline_mode = #tpu.pipeline_mode<synchronous>, transform_indices = @transform_0, window_bounds = array<i64: 4, 128>}, {pipeline_mode = #tpu.pipeline_mode<synchronous>, transform_indices = @transform_1, window_bounds = array<i64: 16, 128>}, {pipeline_mode = #tpu.pipeline_mode<synchronous>, transform_indices = @transform_2, window_bounds = array<i64: 1, 16>}]} {
    %c0 = arith.constant 0 : index
    %c0_0 = arith.constant 0 : index
    %0 = vector.load %arg1[%c0, %c0_0] : memref<4x128xf32, #tpu.memory_space<vmem>>, vector<1x128xf32>
    %c1 = arith.constant 1 : index
    %c0_1 = arith.constant 0 : index
    %1 = vector.load %arg1[%c1, %c0_1] : memref<4x128xf32, #tpu.memory_space<vmem>>, vector<1x128xf32>
    %2 = arith.mulf %0, %1 : vector<1x128xf32>
    %c2 = arith.constant 2 : index
    %c0_2 = arith.constant 0 : index
    %3 = vector.load %arg1[%c2, %c0_2] : memref<4x128xf32, #tpu.memory_space<vmem>>, vector<1x128xf32>
    %c3 = arith.constant 3 : index
    %c0_3 = arith.constant 0 : index
    %4 = vector.load %arg1[%c3, %c0_3] : memref<4x128xf32, #tpu.memory_space<vmem>>, vector<1x128xf32>
    %5 = arith.mulf %3, %4 : vector<1x128xf32>
    %6 = arith.subf %2, %5 : vector<1x128xf32>
    %c0_4 = arith.constant 0 : index
    %c0_5 = arith.constant 0 : index
    %7 = vector.load %arg2[%c0_4, %c0_5] : memref<16x128xf32, #tpu.memory_space<vmem>>, vector<16x128xf32>
    %cst = arith.constant dense<0.000000e+00> : vector<1x16xf32>
    %8 = tpu.matmul %6, %7, %cst {dimension_numbers = #tpu.dot_dimension_numbers<[1], [1], [0], [0], [0, 0, 1, 0], [], []>, precision = #tpu.contract_precision<fp32>} : vector<1x128xf32>, vector<16x128xf32>, vector<1x16xf32> -> vector<1x16xf32>
    %c0_6 = arith.constant 0 : index
    %c0_7 = arith.constant 0 : index
    %9 = vector.load %arg3[%c0_6, %c0_7] : memref<1x16xf32, #tpu.memory_space<vmem>>, vector<1x16xf32>
    tpu.vector_store %arg3[%c0_6, %c0_7], %8 {strides = array<i32>} : memref<1x16xf32, #tpu.memory_space<vmem>>, vector<1x16xf32>,
    return
  }
  func.func @transform_0(%arg0: i32) -> (i32, i32) {
    %c0_i32 = arith.constant 0 : i32
    %c0_i32_0 = arith.constant 0 : i32
    %c0_i32_1 = arith.constant 0 : i32
    return %c0_i32, %c0_i32_0 : i32, i32
  }
  func.func @transform_1(%arg0: i32) -> (i32, i32) {
    %c0_i32 = arith.constant 0 : i32
    %c0_i32_0 = arith.constant 0 : i32
    %c0_i32_1 = arith.constant 0 : i32
    return %c0_i32, %c0_i32_0 : i32, i32
  }
  func.func @transform_2(%arg0: i32) -> (i32, i32) {
    %c0_i32 = arith.constant 0 : i32
    %c0_i32_0 = arith.constant 0 : i32
    %c0_i32_1 = arith.constant 0 : i32
    return %c0_i32, %c0_i32_0 : i32, i32
  }
}

</mosaic_0001>

<bundles_post_ra>
// kernel: tpu_custom_call.1
= control target key start
LH: loop header
LB: loop body
LE: loop exit
PB: predicated region body
PF: predicated region fallthrough
CT: control target
= control target key end

     0   :  { %7 = vsyncpa [#allocation3], 0  ;;  %s342_s0 = inlined_call_operand.hbm [shape: f32[4,128], index: 0, kind: input, shape index: {}]   ;;  %s343_s1 = inlined_call_operand.hbm [shape: f32[16,128], index: 1, kind: input, shape index: {}]   ;;  %s344_s2 = inlined_call_operand.hbm [shape: f32[1,16], index: 2, kind: output, shape index: {}]  }
   0x1   :  { %8 = vsyncpa [#allocation6], 0 }
   0x2   :  { %9 = vsyncpa [#allocation4], 0  ;;  %s15_s11 = sshll.u32 %s342_s0, 4  ;;  %s313_s12 = smov [#allocation2]   ;;  %s16_s11 = int_to_ptr.hbm [resolvable:$true] %s15_s11 }
   0x3   :  { %s17_s13 = sshll.u32 %s313_s12, 4  ;;  %s25_s16 = sshll.u32 %s343_s1, 4  ;;  %s18_s13 = int_to_ptr.vmem [resolvable:$true] %s17_s13  ;;  %s26_s16 = int_to_ptr.hbm [resolvable:$true] %s25_s16 }
   0x4   :  { %20 = dma.hbm_to_vmem [thread:$0]  %s16_s11, 64, %s18_s13, [#allocation3]  }
   0x5   :  { %s314_s17 = smov [#allocation5]   ;;  %s315_s19 = smov 128  }
   0x6   :  { %s27_s18 = sshll.u32 %s314_s17, 4  ;;  %s316_s20 = smov 8   ;;  %s28_s18 = int_to_ptr.vmem [resolvable:$true] %s27_s18 }
   0x7   :  { %33 = dma.hbm_to_vmem [thread:$0]  %s26_s16, 256, %s28_s18, [#allocation6], %s315_s19, %s315_s19, %s316_s20  }
   0x8   :  { %307 = dma.done.wait [#allocation3], 64  }
   0x9   :  { %308 = vsyncadd [#allocation3], 4294967232 }
   0xa   :  { %309 = dma.done.wait [#allocation6], 256  }
   0xb   :  { %310 = vsyncadd [#allocation6], 4294967040  ;;  %v50_v0 = vld [vmem:[#allocation5 + $0x8] sm:$0xff]  ;;  %v49_v1 = vld [vmem:[#allocation5] sm:$0xff]  ;;  %s317_s0 = smov [#allocation7]   ;;  %s219_s23 = sshll.u32 %s344_s2, 4  ;;  %s220_s23 = int_to_ptr.hbm [resolvable:$true] %s219_s23 }
   0xc   :  { %v42_v2 = vld [vmem:[#allocation2] sm:$0x1]  ;;  %v65_v3 = vand.u32 4294901760, %v50_v0  ;;  %v67_v4 = vand.u32 4294901760, %v49_v1  ;;  %v43_v5 = vld [vmem:[#allocation2 + $0x1] sm:$0x1] }
   0xd   :  { %v45_v6 = vld [vmem:[#allocation2 + $0x2] sm:$0x1]  ;;  %v44_v7 = vmul.f32 %v43_v5, %v42_v2  ;;  %v46_v8 = vld [vmem:[#allocation2 + $0x3] sm:$0x1]  ;;  %s217_s1 = sshll.u32 %s317_s0, 4  ;;  %vm210_vm0 = vcmask 122880   ;;  %s218_s1 = int_to_ptr.vmem [resolvable:$true] %s217_s1 }
   0xe   :  { %v93_v9 = vsub.f32 %v50_v0, %v65_v3  ;;  %66 = vmatpush.xpose.msra.mxu0 %v65_v3  ;;  %150 = vmatpush.xpose.msra.mxu3 %v65_v3  ;;  %v99_v10 = vsub.f32 %v49_v1, %v67_v4  ;;  %v47_v11 = vmul.f32 %v46_v8, %v45_v6 }
  0x10   :  { %125 = vmatpush.xpose.msra.mxu2 %v93_v9  ;;  %v94_v12 = vand.u32 4294901760, %v93_v9  ;;  %v48_v13 = vsub.f32 %v44_v7, %v47_v11  ;;  %v100_v14 = vand.u32 4294901760, %v99_v10 }
  0x12   :  { %v95_v15 = vsub.f32 %v93_v9, %v94_v12  ;;  %68 = vmatpush.xpose.msra.mxu0 %v67_v4  ;;  %152 = vmatpush.xpose.msra.mxu3 %v67_v4  ;;  %v69_v16 = vand.u32 4294901760, %v48_v13  ;;  %v101_v17 = vsub.f32 %v99_v10, %v100_v14 }
  0x14   :  { %v96_v18 = vand.u32 4294901760, %v95_v15  ;;  %128 = vmatpush.xpose.msra.mxu2 %v99_v10  ;;  %v70_v19 = vsub.f32 %v48_v13, %v69_v16  ;;  %v102_v20 = vand.u32 4294901760, %v101_v17 }
  0x16   :  { %177 = vmatpush.xpose.msrb.mxu0 %v94_v12  ;;  %97 = vmatpush.xpose.msra.mxu1 %v96_v18  ;;  %v71_v21 = vand.u32 4294901760, %v70_v19 }
  0x17   :  { %131 = vmatmul.f32.vlgmr.msra.gmra.mxu2 %v70_v19 }
  0x18   :  { %v72_v22 = vsub.f32 %v70_v19, %v71_v21  ;;  %156 = vmatmul.f32.vlgmr.msra.gmra.mxu3 %v71_v21 }
  0x1a   :  { %181 = vmatpush.xpose.msrb.mxu0 %v100_v14  ;;  %103 = vmatpush.xpose.msra.mxu1 %v102_v20  ;;  %v73_v23 = vand.u32 4294901760, %v72_v22 }
  0x1c   :  { %74 = vmatmul.f32.vlgmr.msra.gmra.mxu0 %v73_v23 }
  0x1d   :  { %105 = vmatmul.f32.vlgmr.msra.gmra.mxu1 %v69_v16 }
  0x1e   :  { %202 = vmatpush.xpose.msrb.mxu1 %v65_v3 }
  0x22   :  { %204 = vmatpush.xpose.msrb.mxu1 %v67_v4 }
  0x24   :  { %183 = vmatmul.f32.vlgmr.msrb.gmra.mxu0 %v69_v16 }
  0x25   :  { %206 = vmatmul.f32.vlgmr.msrb.gmra.mxu1 %v69_v16 }
  0x99   :  { %v75_v24 = vpop.f32.mrf.mxu0 }
  0x9a   :  { %v106_v25 = vpop.f32.mrf.mxu1  ;;  %v132_v26 = vpop.f32.mrf.mxu2 }
  0x9b   :  { %v107_v27 = vadd.f32 %v106_v25, %v75_v24  ;;  %v157_v28 = vpop.f32.mrf.mxu3 }
  0x9d   :  { %v133_v29 = vadd.f32 %v132_v26, %v107_v27 }
  0x9f   :  { %v158_v30 = vadd.f32 %v157_v28, %v133_v29 }
  0xa1   :  { %v184_v31 = vpop.f32.mrf.mxu0 }
  0xa2   :  { %v185_v32 = vadd.f32 %v184_v31, %v158_v30  ;;  %v207_v33 = vpop.f32.mrf.mxu1 }
  0xa4   :  { %v208_v34 = vadd.f32 %v207_v33, %v185_v32 }
  0xa6   :  { %211 = vst.msk [vmem:[#allocation7] sm:$0x1] %vm210_vm0, %v208_v34 }
  0xa7   :  { %222 = dma.vmem_to_hbm [thread:$0]  %s218_s1, 16, %s220_s23, [#allocation4]  }
  0xa8   :  { %311 = dma.done.wait [#allocation4], 16  }
  0xa9   :  { %312 = vsyncadd [#allocation4], 4294967280 }
  0xaa   :  { %227 = vsyncpa [#allocation3], 1 }
  0xab   :  { %228 = vsyncpa [#allocation6], 1 }
  0xac   :  { %229 = vsyncpa [#allocation4], 1 }

</bundles_post_ra>
